<compile_context>
chip_gen: v5e
topology: v5e:2x2
jax: 0.10.0
libtpu: 0.0.40
codegen_flags: <defaults>
</compile_context>

<pallas_src>
import functools

import numpy as np
import jax
import jax.numpy as jnp
from jax.experimental import pallas as pl
from jax.experimental.pallas import tpu as pltpu


def _haar_level_kernel(x_ref, a_ref, yl_ref, yh_ref, *, precision):
    """One Haar analysis level on a block of TB channel planes.

    x_ref : (TB*H/2, 2W)     each row = (even image row | odd image row)
    a_ref : (W, W)           width analysis matrix, entries +-0.5, cols [lo|hi]
    yl_ref: (TB*H/2, W/2)    LL band
    yh_ref: (TB, 3, H/2, W/2) LH / HL / HH bands (pytorch_wavelets order)
    """
    w = x_ref.shape[1] // 2
    w2 = w // 2
    tb, _, h2, _ = yh_ref.shape

    row_e = x_ref[:, :w]                    # even image rows
    row_o = x_ref[:, w:]                    # odd image rows
    lo = row_e + row_o                      # height lowpass  (unscaled, VPU)
    hi = row_e - row_o                      # height highpass (unscaled, VPU)

    a = a_ref[...]                          # +-0.5 entries, exact in bf16/f16
    zlo = jnp.dot(lo, a, preferred_element_type=jnp.float32, precision=precision)
    zhi = jnp.dot(hi, a, preferred_element_type=jnp.float32, precision=precision)

    odt = yl_ref.dtype
    yl_ref[...] = zlo[:, :w2].astype(odt)                               # LL
    yh_ref[:, 0, :, :] = zhi[:, :w2].reshape(tb, h2, w2).astype(odt)    # LH
    yh_ref[:, 1, :, :] = zlo[:, w2:].reshape(tb, h2, w2).astype(odt)    # HL
    yh_ref[:, 2, :, :] = zhi[:, w2:].reshape(tb, h2, w2).astype(odt)    # HH


def _haar_analysis_matrix(w):
    """(W, W) Haar width-analysis matrix with the full 2-D scale folded in.

    Columns [0:W/2] are lowpass, [W/2:W] highpass; entries are +-0.5, exactly
    representable in bf16/f16 so products are exact and the MXU accumulates
    them exactly in f32.
    """
    m = w // 2
    a = np.zeros((w, w), dtype=np.float32)
    j = np.arange(m)
    a[2 * j, j] = 0.5
    a[2 * j + 1, j] = 0.5
    a[2 * j, m + j] = 0.5
    a[2 * j + 1, m + j] = -0.5
    return a


def _vmem_limit_bytes():
    try:
        cap = int(pltpu.get_tpu_info().vmem_capacity_bytes)
    except Exception:
        cap = 64 << 20  # v7x-safe fallback
    return int(min((cap * 3) // 4, 96 << 20))


def _pick_block_channels(nc, h, w, itemsize, vmem_limit):
    """Channel planes per grid step, from the VMEM budget + layout legality."""
    h2 = h // 2
    sub = max(8, 32 // max(int(itemsize), 1))       # native sublane multiple
    filt_bytes = 2 * w * w * itemsize                # double-buffered filter
    # Per-plane VMEM: double-buffered input, double-buffered (yl + yh) output,
    # f32 matmul results and lo/hi temporaries (all bounded, no unrolled loop).
    per_plane = h * w * (4 * itemsize + 16)
    budget = max(vmem_limit - filt_bytes - (2 << 20), per_plane)
    cap = max(budget // per_plane, 1)

    divisors = [d for d in range(1, nc + 1) if nc % d == 0]
    aligned = [d for d in divisors if d == nc or (d * h2) % sub == 0]
    fitting = [d for d in aligned if d <= cap]
    if not fitting:
        # TODO(synk): huge planes / awkward NC: smallest legal block even if it
        # busts the derived budget (proper fix is tiling along H as well).
        return min(aligned) if aligned else nc
    best = max(fitting)
    multi = [d for d in fitting if nc // d >= 2]     # keep both v7x TCs busy
    if multi and 2 * max(multi) >= best:
        return max(multi)
    return best


def _afb2d_haar_zero(x):
    """One level of the 2D Haar analysis filter bank ('zero' mode, even dims)."""
    N, C, H, W = x.shape
    assert H % 2 == 0 and W % 2 == 0, "Haar + 'zero' mode here assumes even H, W"
    H2, W2 = H // 2, W // 2
    NC = N * C

    if x.dtype == jnp.float32:
        precision = jax.lax.Precision.HIGHEST     # full f32 accuracy in Mosaic
    else:
        precision = jax.lax.Precision.DEFAULT     # native bf16/f16 MXU path

    a = jnp.asarray(_haar_analysis_matrix(W), dtype=x.dtype)
    x2 = x.reshape(NC * H2, 2 * W)                 # free row-major reshape

    vmem_limit = _vmem_limit_bytes()
    tb = _pick_block_channels(NC, H, W, x.dtype.itemsize, vmem_limit)
    rb = tb * H2                                   # input / LL rows per step

    yl, yh = pl.pallas_call(
        functools.partial(_haar_level_kernel, precision=precision),
        out_shape=(
            jax.ShapeDtypeStruct((NC * H2, W2), x.dtype),
            jax.ShapeDtypeStruct((NC, 3, H2, W2), x.dtype),
        ),
        grid=(NC // tb,),
        in_specs=[
            pl.BlockSpec((rb, 2 * W), lambda i: (i, 0)),
            # TODO(synk): the grid-invariant filter is still double-buffered;
            # a single-buffered spec would free W*W*itemsize bytes on v7x.
            pl.BlockSpec((W, W), lambda i: (0, 0)),
        ],
        out_specs=(
            pl.BlockSpec((rb, W2), lambda i: (i, 0)),
            pl.BlockSpec((tb, 3, H2, W2), lambda i: (i, 0, 0, 0)),
        ),
        compiler_params=pltpu.CompilerParams(
            dimension_semantics=("parallel",),
            vmem_limit_bytes=vmem_limit,
        ),
    )(x2, a)

    return yl.reshape(N, C, H2, W2), yh.reshape(N, C, 3, H2, W2)


def dwt_forward(x, J=1):
    """Equivalent of DWTForward(J=J, wave='db1', mode='zero').forward(x).

    Returns (yl, yh) with yl: (N, C, H/2^J, W/2^J) and yh: list of length J,
    yh[j]: (N, C, 3, H/2^(j+1), W/2^(j+1)), finest scale first.
    """
    if x.dtype not in (jnp.float32, jnp.bfloat16, jnp.float16):
        x = x.astype(jnp.float32)
    yh = []
    ll = x
    for _ in range(J):
        ll, high = _afb2d_haar_zero(ll)
        yh.append(high)
    return ll, yh


if __name__ == "__main__":
    key = jax.random.PRNGKey(0)
    x = jax.random.normal(key, (2, 4, 16, 16), dtype=jnp.float32)

    yl, yh = dwt_forward(x, J=1)
    yl = jax.block_until_ready(yl)
    yh0 = jax.block_until_ready(yh[0])

    # Pure-JAX reference (Haar, zero padding, even dims -> no pad needed).
    a = x[:, :, 0::2, 0::2]
    b = x[:, :, 0::2, 1::2]
    c = x[:, :, 1::2, 0::2]
    d = x[:, :, 1::2, 1::2]
    ll_ref = 0.5 * (a + b + c + d)
    lh_ref = 0.5 * (a + b - c - d)
    hl_ref = 0.5 * (a - b + c - d)
    hh_ref = 0.5 * (a - b - c + d)
    high_ref = jnp.stack([lh_ref, hl_ref, hh_ref], axis=2)

    assert yl.shape == (2, 4, 8, 8)
    assert yh0.shape == (2, 4, 3, 8, 8)
    assert jnp.allclose(yl, ll_ref, atol=1e-5)
    assert jnp.allclose(yh0, high_ref, atol=1e-5)

    print("KERNEL_OK")
</pallas_src>

<mosaic_0001>
module attributes {stable_mosaic.version = 11 : i64} {
  func.func @_haar_level_kernel(%arg0: i32, %arg1: memref<32x32xf32, #tpu.memory_space<vmem>>, %arg2: memref<16x16xf32, #tpu.memory_space<vmem>>, %arg3: memref<32x8xf32, #tpu.memory_space<vmem>>, %arg4: memref<4x3x8x8xf32, #tpu.memory_space<vmem>>) attributes {dimension_semantics = [#tpu.dimension_semantics<parallel>], iteration_bounds = array<i64: 2>, scalar_prefetch = 0 : i64, scratch_operands = 0 : i64, tpu.core_type = #tpu.core_type<tc>, window_params = [{transform_indices = @transform_0, window_bounds = array<i64: 32, 32>}, {pipeline_mode = #tpu.pipeline_mode<synchronous>, transform_indices = @transform_1, window_bounds = array<i64: 16, 16>}, {transform_indices = @transform_2, window_bounds = array<i64: 32, 8>}, {transform_indices = @transform_3, window_bounds = array<i64: 4, 3, 8, 8>}]} {
    %c0 = arith.constant 0 : index
    %c0_0 = arith.constant 0 : index
    %0 = vector.load %arg1[%c0, %c0_0] : memref<32x32xf32, #tpu.memory_space<vmem>>, vector<32x16xf32>
    %c0_1 = arith.constant 0 : index
    %c16 = arith.constant 16 : index
    %1 = vector.load %arg1[%c0_1, %c16] : memref<32x32xf32, #tpu.memory_space<vmem>>, vector<32x16xf32>
    %2 = arith.addf %0, %1 : vector<32x16xf32>
    %3 = arith.subf %0, %1 : vector<32x16xf32>
    %c0_2 = arith.constant 0 : index
    %c0_3 = arith.constant 0 : index
    %4 = vector.load %arg2[%c0_2, %c0_3] : memref<16x16xf32, #tpu.memory_space<vmem>>, vector<16x16xf32>
    %cst = arith.constant dense<0.000000e+00> : vector<32x16xf32>
    %5 = tpu.matmul %2, %4, %cst {dimension_numbers = #tpu.dot_dimension_numbers<[1], [0], [0], [1], [0, 0, 1, 1], [], []>, precision = #tpu.contract_precision<fp32>} : vector<32x16xf32>, vector<16x16xf32>, vector<32x16xf32> -> vector<32x16xf32>
    %cst_4 = arith.constant dense<0.000000e+00> : vector<32x16xf32>
    %6 = tpu.matmul %3, %4, %cst_4 {dimension_numbers = #tpu.dot_dimension_numbers<[1], [0], [0], [1], [0, 0, 1, 1], [], []>, precision = #tpu.contract_precision<fp32>} : vector<32x16xf32>, vector<16x16xf32>, vector<32x16xf32> -> vector<32x16xf32>
    %7 = vector.extract_strided_slice %5 {offsets = [0, 0], sizes = [32, 8], strides = [1, 1]} : vector<32x16xf32> to vector<32x8xf32>
    %c0_5 = arith.constant 0 : index
    %c0_6 = arith.constant 0 : index
    %8 = vector.load %arg3[%c0_5, %c0_6] : memref<32x8xf32, #tpu.memory_space<vmem>>, vector<32x8xf32>
    tpu.vector_store %arg3[%c0_5, %c0_6], %7 {strides = array<i32>} : memref<32x8xf32, #tpu.memory_space<vmem>>, vector<32x8xf32>,
    %9 = vector.extract_strided_slice %6 {offsets = [0, 0], sizes = [32, 8], strides = [1, 1]} : vector<32x16xf32> to vector<32x8xf32>
    %10 = vector.shape_cast %9 : vector<32x8xf32> to vector<4x8x8xf32>
    %c0_7 = arith.constant 0 : index
    %c0_8 = arith.constant 0 : index
    %c0_9 = arith.constant 0 : index
    %c0_10 = arith.constant 0 : index
    %11 = vector.load %arg4[%c0_7, %c0_8, %c0_9, %c0_10] : memref<4x3x8x8xf32, #tpu.memory_space<vmem>>, vector<4x1x8x8xf32>
    %12 = vector.shape_cast %11 : vector<4x1x8x8xf32> to vector<4x8x8xf32>
    %13 = vector.shape_cast %10 : vector<4x8x8xf32> to vector<4x1x8x8xf32>
    tpu.vector_store %arg4[%c0_7, %c0_8, %c0_9, %c0_10], %13 {strides = array<i32>} : memref<4x3x8x8xf32, #tpu.memory_space<vmem>>, vector<4x1x8x8xf32>,
    %14 = vector.extract_strided_slice %5 {offsets = [0, 8], sizes = [32, 8], strides = [1, 1]} : vector<32x16xf32> to vector<32x8xf32>
    %15 = vector.shape_cast %14 : vector<32x8xf32> to vector<4x8x8xf32>
    %c0_11 = arith.constant 0 : index
    %c1 = arith.constant 1 : index
    %c0_12 = arith.constant 0 : index
    %c0_13 = arith.constant 0 : index
    %16 = vector.load %arg4[%c0_11, %c1, %c0_12, %c0_13] : memref<4x3x8x8xf32, #tpu.memory_space<vmem>>, vector<4x1x8x8xf32>
    %17 = vector.shape_cast %16 : vector<4x1x8x8xf32> to vector<4x8x8xf32>
    %18 = vector.shape_cast %15 : vector<4x8x8xf32> to vector<4x1x8x8xf32>
    tpu.vector_store %arg4[%c0_11, %c1, %c0_12, %c0_13], %18 {strides = array<i32>} : memref<4x3x8x8xf32, #tpu.memory_space<vmem>>, vector<4x1x8x8xf32>,
    %19 = vector.extract_strided_slice %6 {offsets = [0, 8], sizes = [32, 8], strides = [1, 1]} : vector<32x16xf32> to vector<32x8xf32>
    %20 = vector.shape_cast %19 : vector<32x8xf32> to vector<4x8x8xf32>
    %c0_14 = arith.constant 0 : index
    %c2 = arith.constant 2 : index
    %c0_15 = arith.constant 0 : index
    %c0_16 = arith.constant 0 : index
    %21 = vector.load %arg4[%c0_14, %c2, %c0_15, %c0_16] : memref<4x3x8x8xf32, #tpu.memory_space<vmem>>, vector<4x1x8x8xf32>
    %22 = vector.shape_cast %21 : vector<4x1x8x8xf32> to vector<4x8x8xf32>
    %23 = vector.shape_cast %20 : vector<4x8x8xf32> to vector<4x1x8x8xf32>
    tpu.vector_store %arg4[%c0_14, %c2, %c0_15, %c0_16], %23 {strides = array<i32>} : memref<4x3x8x8xf32, #tpu.memory_space<vmem>>, vector<4x1x8x8xf32>,
    return
  }
  func.func @transform_0(%arg0: i32) -> (i32, i32) {
    %c0_i32 = arith.constant 0 : i32
    %c0_i32_0 = arith.constant 0 : i32
    return %arg0, %c0_i32 : i32, i32
  }
  func.func @transform_1(%arg0: i32) -> (i32, i32) {
    %c0_i32 = arith.constant 0 : i32
    %c0_i32_0 = arith.constant 0 : i32
    %c0_i32_1 = arith.constant 0 : i32
    return %c0_i32, %c0_i32_0 : i32, i32
  }
  func.func @transform_2(%arg0: i32) -> (i32, i32) {
    %c0_i32 = arith.constant 0 : i32
    %c0_i32_0 = arith.constant 0 : i32
    return %arg0, %c0_i32 : i32, i32
  }
  func.func @transform_3(%arg0: i32) -> (i32, i32, i32, i32) {
    %c0_i32 = arith.constant 0 : i32
    %c0_i32_0 = arith.constant 0 : i32
    %c0_i32_1 = arith.constant 0 : i32
    %c0_i32_2 = arith.constant 0 : i32
    return %arg0, %c0_i32, %c0_i32_0, %c0_i32_1 : i32, i32, i32, i32
  }
}

</mosaic_0001>

<bundles_post_ra>
// kernel: tpu_custom_call.1
= control target key start
LH: loop header
LB: loop body
LE: loop exit
PB: predicated region body
PF: predicated region fallthrough
CT: control target
= control target key end

     0   :  { %9 = vsyncpa [#allocation3], 0  ;;  %s1262_s0 = inlined_call_operand.vmem [shape: f32[64,32], index: 0, kind: input, shape index: {}]   ;;  %s1263_s1 = inlined_call_operand.vmem [shape: f32[16,16], index: 1, kind: input, shape index: {}]   ;;  %s1264_s2 = inlined_call_operand.vmem [shape: f32[64,8], index: 2, kind: output, shape index: {0}]   ;;  %s1265_s3 = inlined_call_operand.hbm [shape: f32[8,3,8,8], index: 3, kind: output, shape index: {1}]  }
   0x1   :  { %11 = vsyncpa [#allocation3 + $0x1], 0  ;;  %s1063_s12 = smov 0   ;;  %s1065_s13 = smov 0  }
   0x2   :  { %s1067_s14 = smov 0   ;;  %s1069_s15 = smov 0  }
   0x3 LB: > { %s1084_s16 = sadd.s32 4294967295, %s1037_s15   ;;  %s909_s17 = sadd.s32 4294967294, %s1037_s15   ;;  %s1037_s15 = sphi %s1069_s15, %s1271_s15   ;;  %s1033_s14 = sphi %s1067_s14, %s1270_s14   ;;  %s1029_s13 = sphi %s1065_s13, %s1269_s13   ;;  %s1025_s12 = sphi %s1063_s12, %s1268_s12  }
   0x4   : > { %s1088_s18 = sadd.s32 1, %s1037_s15   ;;  %s97_s19 = sadd.s32 1, %s1033_s14 }
   0x5   : > { %s94_s20 = ssub.s32 %s1037_s15, %s1088_s18  ;;  %p107_p0 = scmp.ne.s32.totalorder %s1033_s14, %s1029_s13 }
   0x6   : > { %p95_p1 = scmp.eq.s32.totalorder %s94_s20, 0  ;;  %p108_p2 = scmp.eq.s32.totalorder %s1084_s16, 1 }
   0x7   : > { %p113_p3 = scmp.ne.s32.totalorder %s1029_s13, %s1025_s12  ;;  %p114_p4 = scmp.eq.s32.totalorder %s909_s17, 1 }
   0x8   : > { %s1099_s21 = scalar_select %p95_p1, %s1033_s14, %s97_s19  }
   0x9   : > { %p1101_p5 = por %p108_p2, %p107_p0  ;;  %p1105_p6 = por %p114_p4, %p113_p3 }
   0xa   : > { %p912_p7 = scmp.ge.s32.totalorder %s1037_s15, 1  ;;  %p144_p8 = scmp.lt.s32.totalorder %s1037_s15, 3 }
   0xc   : > { %p145_p9 = pnand %p912_p7, %p144_p8 }
   0xd   : > { %s913_s24 = sshll.u32 (!%p145_p9), %s1084_s16, 2  ;;  %s1039_s29 = smov (!%p145_p9), 112  }
   0xe   : > { %148 = sbr.rel (%p145_p9) target bundleno = 484 (0x1e4), region = 28  ;;  %p174_p10 = scmp.lt.s32.totalorder (!%p145_p9), %s913_s24, 7 }
   0xf   : > { %s1040_s10 = smov (!%p145_p9), 120   ;;  %s170_s11 = sand.u32 (!%p145_p9), 1, %s1029_s13  }
  0x10   : > { %s930_s17 = smul.u32 (!%p145_p9), 96, %s170_s11  ;;  %s995_s6 = scalar_lea.hbm (!%p145_p9), %s1265_s3, 192 }
  0x11   : > { %s931_s20 = smul.u32 (!%p145_p9), 96, %s1084_s16 }
  0x12   : > { %s1198_s19 = scalar_lea.vmem (!%p145_p9), [#allocation2], %s930_s17 }
  0x13   : > { %s1273_s24 = smov (!%p174_p10, %s913_s24), 7  ;;  %v215_v4 = vld [vmem:[%s1263_s1 + $0x8] sm:$0xff]  ;;  %v214_v6 = vld [vmem:[%s1263_s1] sm:$0xff]  ;;  %vm216_vm0 = vcmask 130048   ;;  %vm745_vm1 = vcmask 64512   ;;  %s818_s26 = scalar_lea.hbm %s1265_s3, %s931_s20 }
  0x14   : > { %s914_s25 = sshll.u32 %s1273_s24, 3  ;;  %v243_v5 = vand.u32 4294901760, %v215_v4  ;;  %v245_v8 = vand.u32 4294901760, %v214_v6  ;;  %s819_s27 = sshll.u32 %s1198_s19, 4  ;;  %s820_s27 = int_to_ptr.vmem [resolvable:$true] %s819_s27 }
  0x15   : > { %s177_s28 = scalar_lea.vmem %s1262_s0, %s914_s25  ;;  %s1181_s9 = scalar_lea.vmem %s1264_s2, %s914_s25 }
  0x16   : > { %v1120_v0 = vld [vmem:[%s177_s28] sm:$0xff]  ;;  %v1122_v1 = vld [vmem:[%s177_s28 + $0x10] sm:$0xff]  ;;  %v1126_v2 = vld [vmem:[%s177_s28 + $0x8] sm:$0xff]  ;;  %v295_v7 = vsub.f32 %v215_v4, %v243_v5  ;;  %379 = vmatpush.msra.mxu3 %v243_v5  ;;  %244 = vmatpush.msra.mxu0 %v243_v5  ;;  %v301_v10 = vsub.f32 %v214_v6, %v245_v8 }
  0x17   : > { %194 = vrot.lane.b32.xlu0 %v1120_v0, %s1039_s29  ;;  %198 = vrot.lane.b32.xlu1 %v1122_v1, %s1039_s29  ;;  %v1128_v3 = vld [vmem:[%s177_s28 + $0x18] sm:$0xff]  ;;  %s821_s28 = sshll.u32 %s818_s26, 4  ;;  %s822_s28 = int_to_ptr.hbm [resolvable:$true] %s821_s28 }
  0x18   : > { %v296_v9 = vand.u32 4294901760, %v295_v7  ;;  %339 = vmatpush.msra.mxu2 %v295_v7  ;;  %381 = vmatpush.msra.mxu3 %v245_v8  ;;  %v302_v12 = vand.u32 4294901760, %v301_v10  ;;  %s989_s30 = sshra.s32 %s822_s28, 4  ;;  %s990_s30 = int_to_ptr.hbm [resolvable:$true] %s989_s30 }
  0x19   : > { %246 = vmatpush.msra.mxu0 %v245_v8  ;;  %s991_s4 = scalar_lea.hbm %s990_s30, 96  ;;  %p996_p0 = scmp.lt.s32.totalorder %s990_s30, %s1265_s3 }
  0x1a   : > { %v297_v11 = vsub.f32 %v295_v7, %v296_v9  ;;  %342 = vmatpush.msra.mxu2 %v301_v10  ;;  %v303_v14 = vsub.f32 %v301_v10, %v302_v12  ;;  %p992_p11 = scmp.ne.s32.totalorder %s990_s30, %s991_s4  ;;  %p997_p1 = scmp.lt.s32.totalorder %s995_s6, %s991_s4 }
  0x1b   : > { %424 = vmatpush.msrb.mxu0 %v296_v9 }
  0x1c   : > { %508 = vmatpush.msrb.mxu2 %v243_v5  ;;  %v298_v13 = vand.u32 4294901760, %v297_v11  ;;  %v304_v15 = vand.u32 4294901760, %v303_v14  ;;  %p993_p12 = pnand %p992_p11, %p1101_p5  ;;  %p998_p2 = por %p997_p1, %p996_p0 }
  0x1d   : > { %428 = vmatpush.msrb.mxu0 %v302_v12 }
  0x1e   : > { %510 = vmatpush.msrb.mxu2 %v245_v8  ;;  %299 = vmatpush.msra.mxu1 %v298_v13  ;;  %p994_p13 = pneg %p993_p12 }
  0x1f   : > { %196 = vrot.lane.b32.xlu0 %v1126_v2, %s1039_s29  ;;  %200 = vrot.lane.b32.xlu1 %v1128_v3, %s1039_s29  ;;  %s802_s29 = scalar_lea.sflag [#allocation3], %s170_s11 }
  0x20   : > { %563 = vmatpush.msrb.mxu3 %v298_v13  ;;  %305 = vmatpush.msra.mxu1 %v304_v15  ;;  %p999_p3 = pnand %p998_p2, %p994_p13 }
  0x22   : > { %569 = vmatpush.msrb.mxu3 %v304_v15  ;;  %461 = vmatpush.msrb.mxu1 %v243_v5 }
  0x24   : > { %463 = vmatpush.msrb.mxu1 %v245_v8 }
  0x89   : > { %v195_v16 = vpop.permute.xlu0 %194  ;;  %v1138_v17 = vpop.permute.xlu1 %198 }
  0x8a   : > { %v206_v18 = vadd.f32 %v195_v16, %v1120_v0  ;;  %v208_v21 = vadd.f32 %v1138_v17, %v1122_v1  ;;  %v210_v35 = vsub.f32 %v1120_v0, %v195_v16  ;;  %v212_v54 = vsub.f32 %v1122_v1, %v1138_v17 }
  0x8c   : > { %v218_v19 = vsel %vm216_vm0, %v206_v18, 0  ;;  %v224_v26 = vsel %vm216_vm0, %v208_v21, 0  ;;  %v482_v40 = vsel %vm216_vm0, %v210_v35, 0  ;;  %v488_v58 = vsel %vm216_vm0, %v212_v54, 0 }
  0x8d   : > { %v1142_v20 = vand.u32 4294901760, %v218_v19  ;;  %v1153_v31 = vand.u32 4294901760, %v224_v26  ;;  %v511_v44 = vand.u32 4294901760, %v482_v40  ;;  %v527_v60 = vand.u32 4294901760, %v488_v58 }
  0x8f   : > { %307 = vmatmul.f32.vlgmr.msra.gmra.mxu1 %v1142_v20  ;;  %v248_v22 = vsub.f32 %v218_v19, %v1142_v20  ;;  %v264_v37 = vsub.f32 %v224_v26, %v1153_v31  ;;  %v512_v48 = vsub.f32 %v482_v40, %v511_v44  ;;  %v528_v0 = vsub.f32 %v488_v58, %v527_v60 }
  0x90   : > { %643 = vmatpush.msra.mxu1 %v243_v5 }
  0x91   : > { %345 = vmatmul.f32.vlgmr.msra.gmra.mxu2 %v248_v22  ;;  %v197_v23 = vpop.permute.xlu0 %196  ;;  %v249_v24 = vand.u32 4294901760, %v248_v22  ;;  %v201_v28 = vpop.permute.xlu1 %200  ;;  %v265_v43 = vand.u32 4294901760, %v264_v37  ;;  %v513_v53 = vand.u32 4294901760, %v512_v48  ;;  %v529_v6 = vand.u32 4294901760, %v528_v0 }
  0x92   : > { %v207_v25 = vadd.f32 %v197_v23, %v1126_v2  ;;  %688 = vmatpush.msra.mxu2 %v296_v9  ;;  %645 = vmatpush.msra.mxu1 %v245_v8  ;;  %v209_v33 = vadd.f32 %v201_v28, %v1128_v3  ;;  %v211_v45 = vsub.f32 %v1126_v2, %v197_v23 }
  0x93   : > { %385 = vmatmul.f32.vlgmr.msra.gmra.mxu3 %v249_v24  ;;  %v250_v27 = vsub.f32 %v248_v22, %v249_v24  ;;  %v266_v46 = vsub.f32 %v264_v37, %v265_v43  ;;  %v514_v57 = vsub.f32 %v512_v48, %v513_v53  ;;  %v213_v63 = vsub.f32 %v1128_v3, %v201_v28 }
  0x94   : > { %v221_v29 = vsel %vm216_vm0, %v207_v25, 0  ;;  %725 = vmatpush.msra.mxu3 %v243_v5  ;;  %692 = vmatpush.msra.mxu2 %v302_v12  ;;  %v227_v38 = vsel %vm216_vm0, %v209_v33, 0  ;;  %v485_v49 = vsel %vm216_vm0, %v211_v45, 0 }
  0x95   : > { %v1151_v30 = vand.u32 4294901760, %v221_v29  ;;  %v251_v32 = vand.u32 4294901760, %v250_v27  ;;  %v271_v41 = vand.u32 4294901760, %v227_v38  ;;  %v267_v50 = vand.u32 4294901760, %v266_v46 }
  0x96   : > { %727 = vmatpush.msra.mxu3 %v245_v8  ;;  %v519_v52 = vand.u32 4294901760, %v485_v49  ;;  %v515_v61 = vand.u32 4294901760, %v514_v57  ;;  %v491_v2 = vsel %vm216_vm0, %v213_v63, 0  ;;  %v530_v8 = vsub.f32 %v528_v0, %v529_v6 }
  0x97   : > { %252 = vmatmul.f32.vlgmr.msra.gmra.mxu0 %v251_v32  ;;  %311 = vmatmul.f32.gmra.mxu1 %v1151_v30  ;;  %v256_v34 = vsub.f32 %v221_v29, %v1151_v30  ;;  %v272_v47 = vsub.f32 %v227_v38, %v271_v41  ;;  %v535_v4 = vand.u32 4294901760, %v491_v2 }
  0x98   : > { %603 = vmatpush.msra.mxu0 %v295_v7  ;;  %v520_v56 = vsub.f32 %v485_v49, %v519_v52  ;;  %v531_v3 = vand.u32 4294901760, %v530_v8 }
  0x99   : > { %350 = vmatmul.f32.gmra.mxu2 %v256_v34  ;;  %v257_v36 = vand.u32 4294901760, %v256_v34  ;;  %v273_v51 = vand.u32 4294901760, %v272_v47  ;;  %v536_v7 = vsub.f32 %v491_v2, %v535_v4 }
  0x9a   : > { %606 = vmatpush.msra.mxu0 %v301_v10  ;;  %v521_v62 = vand.u32 4294901760, %v520_v56 }
  0x9b   : > { %391 = vmatmul.f32.gmra.mxu3 %v257_v36  ;;  %v258_v39 = vsub.f32 %v256_v34, %v257_v36  ;;  %v274_v55 = vsub.f32 %v272_v47, %v273_v51  ;;  %v537_v9 = vand.u32 4294901760, %v536_v7 }
  0x9c   : > { %v522_v1 = vsub.f32 %v520_v56, %v521_v62 }
  0x9d   : > { %v259_v42 = vand.u32 4294901760, %v258_v39  ;;  %v275_v59 = vand.u32 4294901760, %v274_v55  ;;  %v538_v10 = vsub.f32 %v536_v7, %v537_v9 }
  0x9e   : > { %v523_v5 = vand.u32 4294901760, %v522_v1 }
  0x9f   : > { %260 = vmatmul.f32.gmra.mxu0 %v259_v42  ;;  %315 = vmatmul.f32.gmra.mxu1 %v1153_v31  ;;  %v539_v11 = vand.u32 4294901760, %v538_v10 }
  0xa1   : > { %355 = vmatmul.f32.gmra.mxu2 %v264_v37 }
  0xa3   : > { %397 = vmatmul.f32.gmra.mxu3 %v265_v43 }
  0xa7   : > { %268 = vmatmul.f32.gmra.mxu0 %v267_v50  ;;  %319 = vmatmul.f32.gmra.mxu1 %v271_v41 }
  0xa9   : > { %360 = vmatmul.f32.gmra.mxu2 %v272_v47 }
  0xab   : > { %403 = vmatmul.f32.gmra.mxu3 %v273_v51 }
  0xaf   : > { %276 = vmatmul.f32.gmra.mxu0 %v275_v59  ;;  %465 = vmatmul.f32.vlgmr.msrb.gmra.mxu1 %v1142_v20 }
  0xb1   : > { %516 = vmatmul.f32.vlgmr.msrb.gmra.mxu2 %v515_v61 }
  0xb3   : > { %571 = vmatmul.f32.vlgmr.msrb.gmra.mxu3 %v511_v44 }
  0xb7   : > { %430 = vmatmul.f32.vlgmr.msrb.gmra.mxu0 %v1142_v20  ;;  %469 = vmatmul.f32.gmra.mxu1 %v1151_v30 }
  0xb9   : > { %524 = vmatmul.f32.gmra.mxu2 %v523_v5 }
  0xbb   : > { %575 = vmatmul.f32.gmra.mxu3 %v519_v52 }
  0xbf   : > { %434 = vmatmul.f32.gmra.mxu0 %v1151_v30  ;;  %473 = vmatmul.f32.gmra.mxu1 %v1153_v31 }
  0xc1   : > { %532 = vmatmul.f32.gmra.mxu2 %v531_v3 }
  0xc3   : > { %579 = vmatmul.f32.gmra.mxu3 %v527_v60 }
  0xc7   : > { %438 = vmatmul.f32.gmra.mxu0 %v1153_v31  ;;  %477 = vmatmul.f32.gmra.mxu1 %v271_v41 }
  0xc9   : > { %540 = vmatmul.f32.gmra.mxu2 %v539_v11 }
  0xcb   : > { %583 = vmatmul.f32.gmra.mxu3 %v535_v4 }
  0xcf   : > { %442 = vmatmul.f32.gmra.mxu0 %v271_v41  ;;  %649 = vmatmul.f32.vlgmr.msra.gmra.mxu1 %v513_v53 }
  0xd1   : > { %694 = vmatmul.f32.vlgmr.msra.gmra.mxu2 %v511_v44 }
  0xd3   : > { %729 = vmatmul.f32.vlgmr.msra.gmra.mxu3 %v511_v44 }
  0xd7   : > { %609 = vmatmul.f32.vlgmr.msra.gmra.mxu0 %v512_v48  ;;  %655 = vmatmul.f32.gmra.mxu1 %v521_v62 }
  0xd9   : > { %698 = vmatmul.f32.gmra.mxu2 %v519_v52 }
  0xdb   : > { %733 = vmatmul.f32.gmra.mxu3 %v519_v52 }
  0xdf   : > { %614 = vmatmul.f32.gmra.mxu0 %v520_v56  ;;  %661 = vmatmul.f32.gmra.mxu1 %v529_v6 }
  0xe1   : > { %702 = vmatmul.f32.gmra.mxu2 %v527_v60 }
  0xe3   : > { %737 = vmatmul.f32.gmra.mxu3 %v527_v60 }
  0xe7   : > { %619 = vmatmul.f32.gmra.mxu0 %v528_v0  ;;  %667 = vmatmul.f32.gmra.mxu1 %v537_v9 }
  0xe9   : > { %706 = vmatmul.f32.gmra.mxu2 %v535_v4 }
  0xeb   : > { %741 = vmatmul.f32.gmra.mxu3 %v535_v4 }
  0xef   : > { %624 = vmatmul.f32.gmra.mxu0 %v536_v7 }
 0x10c   : > { %v308_v12 = vpop.f32.mrf.mxu1 }
 0x114   : > { %v253_v13 = vpop.f32.mrf.mxu0  ;;  %v312_v14 = vpop.f32.mrf.mxu1 }
 0x115   : > { %v346_v15 = vpop.f32.mrf.mxu2  ;;  %v309_v25 = vadd.f32 %v308_v12, %v253_v13 }
 0x116   : > { %v386_v16 = vpop.f32.mrf.mxu3 }
 0x117   : > { %v347_v30 = vadd.f32 %v346_v15, %v309_v25 }
 0x119   : > { %v387_v31 = vadd.f32 %v386_v16, %v347_v30 }
 0x11c   : > { %v261_v17 = vpop.f32.mrf.mxu0  ;;  %v316_v18 = vpop.f32.mrf.mxu1 }
 0x11d   : > { %v351_v19 = vpop.f32.mrf.mxu2  ;;  %v313_v32 = vadd.f32 %v312_v14, %v261_v17 }
 0x11e   : > { %v392_v20 = vpop.f32.mrf.mxu3 }
 0x11f   : > { %v352_v38 = vadd.f32 %v351_v19, %v313_v32 }
 0x121   : > { %v393_v40 = vadd.f32 %v392_v20, %v352_v38 }
 0x124   : > { %v269_v21 = vpop.f32.mrf.mxu0  ;;  %v320_v22 = vpop.f32.mrf.mxu1 }
 0x125   : > { %v356_v23 = vpop.f32.mrf.mxu2  ;;  %v317_v41 = vadd.f32 %v316_v18, %v269_v21 }
 0x126   : > { %v398_v24 = vpop.f32.mrf.mxu3 }
 0x127   : > { %v357_v47 = vadd.f32 %v356_v23, %v317_v41 }
 0x129   : > { %v399_v49 = vadd.f32 %v398_v24, %v357_v47 }
 0x12c   : > { %v277_v26 = vpop.f32.mrf.mxu0  ;;  %v466_v27 = vpop.f32.mrf.mxu1 }
 0x12d   : > { %v361_v28 = vpop.f32.mrf.mxu2  ;;  %v321_v50 = vadd.f32 %v320_v22, %v277_v26 }
 0x12e   : > { %v404_v29 = vpop.f32.mrf.mxu3 }
 0x12f   : > { %v362_v56 = vadd.f32 %v361_v28, %v321_v50 }
 0x131   : > { %v405_v58 = vadd.f32 %v404_v29, %v362_v56 }
 0x134   : > { %v431_v33 = vpop.f32.mrf.mxu0  ;;  %v470_v34 = vpop.f32.mrf.mxu1 }
 0x135   : > { %v432_v35 = vadd.f32 %v431_v33, %v387_v31  ;;  %v517_v36 = vpop.f32.mrf.mxu2 }
 0x136   : > { %v572_v37 = vpop.f32.mrf.mxu3 }
 0x137   : > { %v467_v39 = vadd.f32 %v466_v27, %v432_v35  ;;  %v573_v1 = vadd.f32 %v572_v37, %v517_v36 }
 0x139   : > { %758 = vrot.lane.b32.xlu2 %v467_v39, %s1040_s10  ;;  %746 = vst.msk [vmem:[%s1181_s9] sm:$0xff] %vm745_vm1, %v467_v39 }
 0x13c   : > { %v435_v42 = vpop.f32.mrf.mxu0  ;;  %v474_v43 = vpop.f32.mrf.mxu1 }
 0x13d   : > { %v436_v44 = vadd.f32 %v435_v42, %v393_v40  ;;  %v525_v45 = vpop.f32.mrf.mxu2 }
 0x13e   : > { %v576_v46 = vpop.f32.mrf.mxu3 }
 0x13f   : > { %v471_v48 = vadd.f32 %v470_v34, %v436_v44  ;;  %v577_v9 = vadd.f32 %v576_v46, %v525_v45 }
 0x141   : > { %747 = vst.msk [vmem:[%s1181_s9 + $0x8] sm:$0xff] %vm745_vm1, %v471_v48  ;;  %760 = vrot.lane.b32.xlu2 %v471_v48, %s1040_s10 }
 0x144   : > { %v439_v51 = vpop.f32.mrf.mxu0  ;;  %v478_v54 = vpop.f32.mrf.mxu1 }
 0x145   : > { %v440_v52 = vadd.f32 %v439_v51, %v399_v49  ;;  %v533_v53 = vpop.f32.mrf.mxu2 }
 0x146   : > { %v580_v55 = vpop.f32.mrf.mxu3 }
 0x147   : > { %v475_v57 = vadd.f32 %v474_v43, %v440_v52  ;;  %v581_v17 = vadd.f32 %v580_v55, %v533_v53 }
 0x149   : > { %748 = vst.msk [vmem:[%s1181_s9 + $0x10] sm:$0xff] %vm745_vm1, %v475_v57  ;;  %762 = vrot.lane.b32.xlu0 %v475_v57, %s1040_s10 }
 0x14c   : > { %v443_v59 = vpop.f32.mrf.mxu0  ;;  %v650_v0 = vpop.f32.mrf.mxu1 }
 0x14d   : > { %v444_v60 = vadd.f32 %v443_v59, %v405_v58  ;;  %v541_v61 = vpop.f32.mrf.mxu2 }
 0x14e   : > { %v584_v62 = vpop.f32.mrf.mxu3 }
 0x14f   : > { %v479_v63 = vadd.f32 %v478_v54, %v444_v60  ;;  %v585_v26 = vadd.f32 %v584_v62, %v541_v61 }
 0x151   : > { %749 = vst.msk [vmem:[%s1181_s9 + $0x18] sm:$0xff] %vm745_vm1, %v479_v63  ;;  %764 = vrot.lane.b32.xlu1 %v479_v63, %s1040_s10 }
 0x154   : > { %v610_v2 = vpop.f32.mrf.mxu0  ;;  %v656_v3 = vpop.f32.mrf.mxu1 }
 0x155   : > { %v611_v4 = vadd.f32 %v610_v2, %v573_v1  ;;  %v695_v5 = vpop.f32.mrf.mxu2 }
 0x156   : > { %v730_v6 = vpop.f32.mrf.mxu3 }
 0x157   : > { %v651_v7 = vadd.f32 %v650_v0, %v611_v4 }
 0x159   : > { %v696_v8 = vadd.f32 %v695_v5, %v651_v7 }
 0x15b   : > { %v731_v10 = vadd.f32 %v730_v6, %v696_v8 }
 0x15c   : > { %v615_v11 = vpop.f32.mrf.mxu0  ;;  %v662_v19 = vpop.f32.mrf.mxu1 }
 0x15d   : > { %750 = vst.msk [vmem:[%s1198_s19] sm:$0xff] %vm745_vm1, %v731_v10  ;;  %v616_v12 = vadd.f32 %v615_v11, %v577_v9  ;;  %v699_v13 = vpop.f32.mrf.mxu2  ;;  %779 = vrot.lane.b32.xlu2 %v731_v10, %s1040_s10 }
 0x15e   : > { %v734_v14 = vpop.f32.mrf.mxu3 }
 0x15f   : > { %v657_v15 = vadd.f32 %v656_v3, %v616_v12 }
 0x161   : > { %v700_v16 = vadd.f32 %v699_v13, %v657_v15 }
 0x163   : > { %v735_v18 = vadd.f32 %v734_v14, %v700_v16 }
 0x164   : > { %v620_v20 = vpop.f32.mrf.mxu0  ;;  %v668_v30 = vpop.f32.mrf.mxu1 }
 0x165   : > { %751 = vst.msk [vmem:[%s1198_s19 + $0x18] sm:$0xff] %vm745_vm1, %v735_v18  ;;  %v621_v21 = vadd.f32 %v620_v20, %v581_v17  ;;  %781 = vrot.lane.b32.xlu0 %v735_v18, %s1040_s10  ;;  %v703_v22 = vpop.f32.mrf.mxu2 }
 0x166   : > { %v738_v24 = vpop.f32.mrf.mxu3 }
 0x167   : > { %v663_v23 = vadd.f32 %v662_v19, %v621_v21 }
 0x169   : > { %v704_v25 = vadd.f32 %v703_v22, %v663_v23 }
 0x16b   : > { %v739_v27 = vadd.f32 %v738_v24, %v704_v25 }
 0x16c   : > { %v625_v28 = vpop.f32.mrf.mxu0 }
 0x16d   : > { %752 = vst.msk [vmem:[%s1198_s19 + $0x30] sm:$0xff] %vm745_vm1, %v739_v27  ;;  %v626_v29 = vadd.f32 %v625_v28, %v585_v26  ;;  %783 = vrot.lane.b32.xlu1 %v739_v27, %s1040_s10  ;;  %v707_v32 = vpop.f32.mrf.mxu2 }
 0x16e   : > { %v742_v34 = vpop.f32.mrf.mxu3 }
 0x16f   : > { %v669_v31 = vadd.f32 %v668_v30, %v626_v29 }
 0x171   : > { %v708_v33 = vadd.f32 %v707_v32, %v669_v31 }
 0x173   : > { %v743_v35 = vadd.f32 %v742_v34, %v708_v33 }
 0x175   : > { %753 = vst.msk [vmem:[%s1198_s19 + $0x48] sm:$0xff] %vm745_vm1, %v743_v35  ;;  %785 = vrot.lane.b32.xlu2 %v743_v35, %s1040_s10 }
 0x193   : > { %v759_v36 = vpop.permute.xlu2 %758 }
 0x194   : > { %917 = vst.msk [vmem:[%s1198_s19 + $0x8] sm:$0xff] %vm745_vm1, %v759_v36 }
 0x19b   : > { %v761_v37 = vpop.permute.xlu2 %760 }
 0x19c   : > { %918 = vst.msk [vmem:[%s1198_s19 + $0x20] sm:$0xff] %vm745_vm1, %v761_v37 }
 0x1b7   : > { %v780_v38 = vpop.permute.xlu2 %779 }
 0x1b8   : > { %921 = vst.msk [vmem:[%s1198_s19 + $0x10] sm:$0xff] %vm745_vm1, %v780_v38 }
 0x1bb   : > { %v763_v39 = vpop.permute.xlu0 %762 }
 0x1bc   : > { %919 = vst.msk [vmem:[%s1198_s19 + $0x38] sm:$0xff] %vm745_vm1, %v763_v39 }
 0x1c3   : > { %v765_v40 = vpop.permute.xlu1 %764 }
 0x1c4   : > { %920 = vst.msk [vmem:[%s1198_s19 + $0x50] sm:$0xff] %vm745_vm1, %v765_v40 }
 0x1cf   : > { %v786_v41 = vpop.permute.xlu2 %785 }
 0x1d0   : > { %924 = vst.msk [vmem:[%s1198_s19 + $0x58] sm:$0xff] %vm745_vm1, %v786_v41 }
 0x1d7   : > { %v782_v42 = vpop.permute.xlu0 %781 }
 0x1d8   : > { %922 = vst.msk [vmem:[%s1198_s19 + $0x28] sm:$0xff] %vm745_vm1, %v782_v42 }
 0x1df   : > { %v784_v43 = vpop.permute.xlu1 %783 }
 0x1e0   : > { %923 = vst.msk [vmem:[%s1198_s19 + $0x40] sm:$0xff] %vm745_vm1, %v784_v43 }
 0x1e1   : > { %1002 = shalt.err (!%p999_p3)
}
 0x1e2   : > { %s1041_s9 = smov 128   ;;  %s1042_s10 = smov 8  }
 0x1e3   : > { %932 = dma.vmem_to_hbm [thread:$0]  (%p1101_p5), %s820_s27, 1536, %s822_s28, %s802_s29, %s1041_s9, %s1041_s9, %s1042_s10  }
 0x1e4 PF: > { %p938_p4 = scmp.ge.s32.totalorder %s1037_s15, 2  ;;  %s844_s11 = sand.u32 1, %s1025_s12  }
 0x1e5   : > { %s845_s17 = scalar_lea.sflag [#allocation3], %s844_s11 }
 0x1e6   : > { %p935_p7 = pnand %p938_p4, %p1105_p6 }
 0x1e8   : > { %p936_p8 = pneg %p935_p7 }
 0x1ea   : > { %1020 = dma.done.wait (%p936_p8), %s845_s17, 1536  }
 0x1eb   : > { %1022 = vsyncadd (%p936_p8), %s845_s17, 4294965760  ;;  %p14_p9 = scmp.ge.s32.totalorder %s1088_s18, 4   ;;  %s1268_s12 = smov %s1029_s13 }
 0x1ec   : > { %s1269_s13 = smov %s1033_s14  ;;  %s1270_s14 = smov %s1099_s21 }
 0x1ed   : > { %s1271_s15 = smov %s1088_s18  ;;  %16 = sbr.rel (!%p14_p9) target bundleno = 3 (0x3), region = 77 }
 0x1f2   :  { %851 = vsyncpa [#allocation3], 1 }
 0x1f3   :  { %853 = vsyncpa [#allocation3 + $0x1], 1 }

</bundles_post_ra>
